<compile_context>
chip_gen: v5e
topology: v5e:2x2
jax: 0.10.0
libtpu: 0.0.40
codegen_flags: <defaults>
</compile_context>

<pallas_src>
import functools

import jax
import jax.numpy as jnp
import numpy as np
from jax.experimental import pallas as pl
from jax.experimental.pallas import tpu as pltpu

_MIN_VMEM_LIMIT = 32 * 1024 * 1024    # default scoped limit, plenty for small D/H
_MAX_VMEM_LIMIT = 64 * 1024 * 1024    # v7x physical VMEM per TensorCore
_X_TILE_BUDGET = 16 * 1024 * 1024     # budget for the double-buffered x tiles


def _round_up(x, m):
    return ((x + m - 1) // m) * m


def _cdiv(a, b):
    return (a + b - 1) // b


def _pick_tile_n(n, d):
    # Largest tile whose double-buffered x slices fit the budget, capped at
    # 2048 rows (per-grid-step overhead ~0.35 us is well amortized before
    # that) and never larger than the (8-row padded) batch itself.
    rows = _X_TILE_BUDGET // max(2 * d * 4, 1)
    rows = max(8, min(2048, rows))
    rows = min(rows, _round_up(max(n, 8), 8))
    return _round_up(rows, 8)


def _vmem_limit_bytes(tile_n, d, h):
    # Conservative footprint: assume every operand is double-buffered even
    # though the weight index_maps are constant (Pallas skips the re-DMA but
    # may still allocate two buffers).
    x_buf = 2 * tile_n * d * 4
    w_buf = 2 * d * h * 4 + 4 * h * 4          # w1 + (b1, w2)
    io_buf = 2 * 2 * tile_n * 4                # pred + y tiles
    misc = 256 * 1024                          # partial-sum blocks, slack
    need = x_buf + w_buf + io_buf + misc
    return int(max(_MIN_VMEM_LIMIT, min(_MAX_VMEM_LIMIT, 2 * need)))


def _mlp_pred_kernel(x_ref, w1_ref, b1_ref, w2_ref, b2_ref, pred_ref):
    # First layer on the MXU with f32 accumulation.
    h = jnp.dot(x_ref[...], w1_ref[...], preferred_element_type=jnp.float32)
    h = jnp.maximum(h + b1_ref[...], 0.0)
    # Second layer has a single output unit: VPU multiply + lane reduction
    # instead of a 1-result-lane MXU matmul.
    p = jnp.sum(h * w2_ref[...], axis=-1, keepdims=True) + b2_ref[0, 0]
    pred_ref[...] = p.astype(pred_ref.dtype)
    # Rows past N in the (possibly partial) last block are dropped on write.


def _mlp_loss_kernel(x_ref, w1_ref, b1_ref, w2_ref, b2_ref, y_ref,
                     pred_ref, mae_ref, mse_ref, *, n_valid, tile_n, ragged):
    i = pl.program_id(0)

    h = jnp.dot(x_ref[...], w1_ref[...], preferred_element_type=jnp.float32)
    h = jnp.maximum(h + b1_ref[...], 0.0)
    p = jnp.sum(h * w2_ref[...], axis=-1, keepdims=True) + b2_ref[0, 0]
    pred_ref[...] = p.astype(pred_ref.dtype)

    diff = p - y_ref[...]

    if not ragged:
        # N % tile_n == 0: every tile is fully valid, no masking anywhere.
        mae_ref[...] = jnp.full((1, 1, 1), jnp.sum(jnp.abs(diff)), jnp.float32)
        mse_ref[...] = jnp.full((1, 1, 1), jnp.sum(diff * diff), jnp.float32)
    else:
        last = pl.num_programs(0) - 1

        @pl.when(i < last)
        def _():
            # Non-last tiles are always fully valid: no iota/compare/select.
            mae_ref[...] = jnp.full((1, 1, 1), jnp.sum(jnp.abs(diff)), jnp.float32)
            mse_ref[...] = jnp.full((1, 1, 1), jnp.sum(diff * diff), jnp.float32)

        @pl.when(i == last)
        def _():
            # Mask out the batch-padding rows of the partial last block so
            # the (undefined) OOB data does not pollute the reductions.
            row = i * tile_n + jax.lax.broadcasted_iota(jnp.int32, diff.shape, 0)
            d_m = jnp.where(row < n_valid, diff, 0.0)
            mae_ref[...] = jnp.full((1, 1, 1), jnp.sum(jnp.abs(d_m)), jnp.float32)
            mse_ref[...] = jnp.full((1, 1, 1), jnp.sum(d_m * d_m), jnp.float32)


@functools.partial(jax.jit, static_argnames=("with_loss",))
def mlp_regression_forward(x, w1, b1, w2, b2, y=None, *, with_loss=False):
    """x:[N,D], w1:[D,H], b1:[1,H], w2:[1,H], b2:[1,1], optional y:[N,1]."""
    n, d = x.shape
    h = w1.shape[1]

    tile_n = _pick_tile_n(n, d)
    num_tiles = _cdiv(n, tile_n)
    ragged = (n % tile_n) != 0
    grid = (num_tiles,)
    vmem_limit = _vmem_limit_bytes(tile_n, d, h)

    # Tiled batch dim; weights/biases resident (constant index_map); b2 in SMEM.
    x_spec = pl.BlockSpec((tile_n, d), lambda i: (i, 0))
    w1_spec = pl.BlockSpec((d, h), lambda i: (0, 0))
    b1_spec = pl.BlockSpec((1, h), lambda i: (0, 0))
    w2_spec = pl.BlockSpec((1, h), lambda i: (0, 0))
    b2_spec = pl.BlockSpec(memory_space=pltpu.MemorySpace.SMEM)
    pred_spec = pl.BlockSpec((tile_n, 1), lambda i: (i, 0))

    flops = 2 * n * d * h + 4 * n * h
    base_bytes = 4 * (n * d + d * h + 2 * h + 1 + n)

    if not with_loss:
        pred = pl.pallas_call(
            _mlp_pred_kernel,
            out_shape=jax.ShapeDtypeStruct((n, 1), jnp.float32),
            grid=grid,
            in_specs=[x_spec, w1_spec, b1_spec, w2_spec, b2_spec],
            out_specs=pred_spec,
            compiler_params=pltpu.CompilerParams(
                dimension_semantics=("parallel",),      # megacore on v7x
                vmem_limit_bytes=vmem_limit),
            cost_estimate=pl.CostEstimate(
                flops=flops, transcendentals=0, bytes_accessed=base_bytes),
        )(x, w1, b1, w2, b2)
        return pred

    y_spec = pl.BlockSpec((tile_n, 1), lambda i: (i, 0))
    part_spec = pl.BlockSpec((1, 1, 1), lambda i: (i, 0, 0))

    kernel = functools.partial(_mlp_loss_kernel,
                               n_valid=n, tile_n=tile_n, ragged=ragged)
    pred, mae_parts, mse_parts = pl.pallas_call(
        kernel,
        out_shape=(
            jax.ShapeDtypeStruct((n, 1), jnp.float32),            # pred
            jax.ShapeDtypeStruct((num_tiles, 1, 1), jnp.float32),  # mae partials
            jax.ShapeDtypeStruct((num_tiles, 1, 1), jnp.float32),  # mse partials
        ),
        grid=grid,
        in_specs=[x_spec, w1_spec, b1_spec, w2_spec, b2_spec, y_spec],
        out_specs=(pred_spec, part_spec, part_spec),
        compiler_params=pltpu.CompilerParams(
            dimension_semantics=("parallel",),          # per-tile partials -> both TCs
            vmem_limit_bytes=vmem_limit),
        cost_estimate=pl.CostEstimate(
            flops=flops + 4 * n, transcendentals=0,
            bytes_accessed=base_bytes + 4 * (n + 2 * num_tiles)),
    )(x, w1, b1, w2, b2, y)

    inv_n = jnp.float32(1.0 / n)      # normalize by the GLOBAL (unpadded) count
    mae = jnp.sum(mae_parts) * inv_n
    mse = jnp.sum(mse_parts) * inv_n
    return pred, mae, mse


def _reference(x, w1, b1, w2, b2, y):
    h = jnp.maximum(x @ w1 + b1, 0.0)
    pred = h @ w2.T + b2
    mae = jnp.mean(jnp.abs(pred - y))
    mse = jnp.mean((pred - y) ** 2)
    return pred, mae, mse


if __name__ == "__main__":
    def _run_case(n, d, h, key):
        kx, ky, k1, k2, k3, k4 = jax.random.split(key, 6)
        x = jax.random.normal(kx, (n, d), jnp.float32)
        y = jax.random.normal(ky, (n, 1), jnp.float32)
        # Deterministic parameter init (exact init scheme does not change semantics).
        w1 = jax.random.normal(k1, (d, h), jnp.float32) * 0.1   # = Linear1.weight.T
        b1 = jax.random.normal(k2, (1, h), jnp.float32) * 0.1
        w2 = jax.random.normal(k3, (1, h), jnp.float32) * 0.1   # = Linear2.weight
        b2 = jax.random.normal(k4, (1, 1), jnp.float32) * 0.1

        # Forward without targets -> pred only.
        pred_only = mlp_regression_forward(x, w1, b1, w2, b2, with_loss=False)
        # Forward with targets -> (pred, mae, mse).
        pred, mae, mse = mlp_regression_forward(x, w1, b1, w2, b2, y, with_loss=True)
        jax.block_until_ready((pred_only, pred, mae, mse))

        # Check against a pure-JAX reference.
        ref_pred, ref_mae, ref_mse = _reference(x, w1, b1, w2, b2, y)
        np.testing.assert_allclose(np.asarray(pred_only), np.asarray(ref_pred),
                                   rtol=1e-5, atol=1e-5)
        np.testing.assert_allclose(np.asarray(pred), np.asarray(ref_pred),
                                   rtol=1e-5, atol=1e-5)
        np.testing.assert_allclose(float(mae), float(ref_mae), rtol=1e-5, atol=1e-5)
        np.testing.assert_allclose(float(mse), float(ref_mse), rtol=1e-5, atol=1e-5)

    key = jax.random.PRNGKey(0)
    k_even, k_ragged = jax.random.split(key)
    # Small shapes: input_size=32, hidden_size=32.
    _run_case(8, 32, 32, k_even)     # batch multiple of the tile: no masking path
    _run_case(13, 32, 32, k_ragged)  # ragged batch: partial last block + pl.when mask

    print("KERNEL_OK")
</pallas_src>

<mosaic_0001>
module attributes {stable_mosaic.version = 11 : i64} {
  func.func @_mlp_pred_kernel(%arg0: i32, %arg1: memref<8x32xf32, #tpu.memory_space<vmem>>, %arg2: memref<32x32xf32, #tpu.memory_space<vmem>>, %arg3: memref<1x32xf32, #tpu.memory_space<vmem>>, %arg4: memref<1x32xf32, #tpu.memory_space<vmem>>, %arg5: memref<1x1xf32, #tpu.memory_space<smem>>, %arg6: memref<8x1xf32, #tpu.memory_space<vmem>>) attributes {dimension_semantics = [#tpu.dimension_semantics<parallel>], iteration_bounds = array<i64: 1>, scalar_prefetch = 0 : i64, scratch_operands = 0 : i64, tpu.core_type = #tpu.core_type<tc>, window_params = [{transform_indices = @transform_0, window_bounds = array<i64: 8, 32>}, {pipeline_mode = #tpu.pipeline_mode<synchronous>, transform_indices = @transform_1, window_bounds = array<i64: 32, 32>}, {pipeline_mode = #tpu.pipeline_mode<synchronous>, transform_indices = @transform_2, window_bounds = array<i64: 1, 32>}, {pipeline_mode = #tpu.pipeline_mode<synchronous>, transform_indices = @transform_3, window_bounds = array<i64: 1, 32>}, {transform_indices = @transform_4, window_bounds = array<i64: 1, 1>}, {transform_indices = @transform_5, window_bounds = array<i64: 8, 1>}]} {
    %c0 = arith.constant 0 : index
    %c0_0 = arith.constant 0 : index
    %0 = vector.load %arg1[%c0, %c0_0] : memref<8x32xf32, #tpu.memory_space<vmem>>, vector<8x32xf32>
    %c0_1 = arith.constant 0 : index
    %c0_2 = arith.constant 0 : index
    %1 = vector.load %arg2[%c0_1, %c0_2] : memref<32x32xf32, #tpu.memory_space<vmem>>, vector<32x32xf32>
    %cst = arith.constant dense<0.000000e+00> : vector<8x32xf32>
    %2 = tpu.matmul %0, %1, %cst {dimension_numbers = #tpu.dot_dimension_numbers<[1], [0], [0], [1], [0, 0, 1, 1], [], []>} : vector<8x32xf32>, vector<32x32xf32>, vector<8x32xf32> -> vector<8x32xf32>
    %c0_3 = arith.constant 0 : index
    %c0_4 = arith.constant 0 : index
    %3 = vector.load %arg3[%c0_3, %c0_4] : memref<1x32xf32, #tpu.memory_space<vmem>>, vector<1x32xf32>
    %4 = vector.broadcast %3 : vector<1x32xf32> to vector<8x32xf32>
    %5 = arith.addf %2, %4 : vector<8x32xf32>
    %cst_5 = arith.constant 0.000000e+00 : f32
    %6 = vector.broadcast %cst_5 : f32 to vector<8x32xf32>
    %7 = arith.maximumf %5, %6 : vector<8x32xf32>
    %c0_6 = arith.constant 0 : index
    %c0_7 = arith.constant 0 : index
    %8 = vector.load %arg4[%c0_6, %c0_7] : memref<1x32xf32, #tpu.memory_space<vmem>>, vector<1x32xf32>
    %9 = vector.broadcast %8 : vector<1x32xf32> to vector<8x32xf32>
    %10 = arith.mulf %7, %9 : vector<8x32xf32>
    %cst_8 = arith.constant dense<0.000000e+00> : vector<8xf32>
    %11 = vector.multi_reduction <add>, %10, %cst_8 [1] : vector<8x32xf32> to vector<8xf32>
    %12 = vector.shape_cast %11 : vector<8xf32> to vector<8x1xf32>
    %c0_9 = arith.constant 0 : index
    %c0_10 = arith.constant 0 : index
    %13 = memref.load %arg5[%c0_9, %c0_10] : memref<1x1xf32, #tpu.memory_space<smem>>
    %14 = vector.broadcast %13 : f32 to vector<8x1xf32>
    %15 = arith.addf %12, %14 : vector<8x1xf32>
    %c0_11 = arith.constant 0 : index
    %c0_12 = arith.constant 0 : index
    %16 = vector.load %arg6[%c0_11, %c0_12] : memref<8x1xf32, #tpu.memory_space<vmem>>, vector<8x1xf32>
    tpu.vector_store %arg6[%c0_11, %c0_12], %15 {strides = array<i32>} : memref<8x1xf32, #tpu.memory_space<vmem>>, vector<8x1xf32>,
    return
  }
  func.func @transform_0(%arg0: i32) -> (i32, i32) {
    %c0_i32 = arith.constant 0 : i32
    %c0_i32_0 = arith.constant 0 : i32
    return %arg0, %c0_i32 : i32, i32
  }
  func.func @transform_1(%arg0: i32) -> (i32, i32) {
    %c0_i32 = arith.constant 0 : i32
    %c0_i32_0 = arith.constant 0 : i32
    %c0_i32_1 = arith.constant 0 : i32
    return %c0_i32, %c0_i32_0 : i32, i32
  }
  func.func @transform_2(%arg0: i32) -> (i32, i32) {
    %c0_i32 = arith.constant 0 : i32
    %c0_i32_0 = arith.constant 0 : i32
    %c0_i32_1 = arith.constant 0 : i32
    return %c0_i32, %c0_i32_0 : i32, i32
  }
  func.func @transform_3(%arg0: i32) -> (i32, i32) {
    %c0_i32 = arith.constant 0 : i32
    %c0_i32_0 = arith.constant 0 : i32
    %c0_i32_1 = arith.constant 0 : i32
    return %c0_i32, %c0_i32_0 : i32, i32
  }
  func.func @transform_4(%arg0: i32) -> (i32, i32) {
    %c0_i32 = arith.constant 0 : i32
    %c0_i32_0 = arith.constant 0 : i32
    %c0_i32_1 = arith.constant 0 : i32
    return %c0_i32, %c0_i32_0 : i32, i32
  }
  func.func @transform_5(%arg0: i32) -> (i32, i32) {
    %c0_i32 = arith.constant 0 : i32
    %c0_i32_0 = arith.constant 0 : i32
    return %arg0, %c0_i32 : i32, i32
  }
}

</mosaic_0001>

<bundles_post_ra>
// kernel: mlp_regression_forward.1
= control target key start
LH: loop header
LB: loop body
LE: loop exit
PB: predicated region body
PF: predicated region fallthrough
CT: control target
= control target key end

     0   :  { %11 = vsyncpa [#allocation4], 0  ;;  %s215_s0 = inlined_call_operand.hbm [shape: f32[8,32], index: 0, kind: input, shape index: {}]   ;;  %s216_s1 = inlined_call_operand.hbm [shape: f32[32,32], index: 1, kind: input, shape index: {}]   ;;  %s217_s2 = inlined_call_operand.vmem [shape: f32[1,32], index: 2, kind: input, shape index: {}]   ;;  %s218_s3 = inlined_call_operand.vmem [shape: f32[1,32], index: 3, kind: input, shape index: {}]   ;;  %s219_s4 = inlined_call_operand.<no memory space> [shape: f32[1,1], index: 4, kind: input, shape index: {}]   ;;  %s220_s5 = inlined_call_operand.vmem [shape: f32[8,1], index: 5, kind: output, shape index: {}]  }
   0x1   :  { %s18_s20 = sshll.u32 %s215_s0, 4  ;;  %s19_s20 = int_to_ptr.hbm [resolvable:$true] %s18_s20 }
   0x2   :  { %12 = vsyncpa [#allocation6], 0  ;;  %s163_s21 = smov [#allocation3]   ;;  %s28_s25 = sshll.u32 %s216_s1, 4  ;;  %s29_s25 = int_to_ptr.hbm [resolvable:$true] %s28_s25 }
   0x3   :  { %s20_s22 = sshll.u32 %s163_s21, 4  ;;  %s164_s26 = smov [#allocation5]   ;;  %s21_s22 = int_to_ptr.vmem [resolvable:$true] %s20_s22 }
   0x4   :  { %23 = dma.hbm_to_vmem [thread:$0]  %s19_s20, 128, %s21_s22, [#allocation4]  }
   0x5   :  { %s30_s27 = sshll.u32 %s164_s26, 4  ;;  %s165_s28 = smov 128   ;;  %s31_s27 = int_to_ptr.vmem [resolvable:$true] %s30_s27 }
   0x6   :  { %s166_s29 = smov 8  }
   0x7   :  { %36 = dma.hbm_to_vmem [thread:$0]  %s29_s25, 512, %s31_s27, [#allocation6], %s165_s28, %s165_s28, %s166_s29  }
   0x8   :  { %159 = dma.done.wait [#allocation4], 128  }
   0x9   :  { %160 = vsyncadd [#allocation4], 4294967168 }
   0xa   :  { %161 = dma.done.wait [#allocation6], 512  }
   0xb   :  { %162 = vsyncadd [#allocation6], 4294966784  ;;  %v55_v0 = vld [vmem:[#allocation5 + $0x18] sm:$0xff]  ;;  %v54_v1 = vld [vmem:[#allocation5 + $0x10] sm:$0xff]  ;;  %vm60_vm0 = vcmask 261120   ;;  %v94_v12 = vstv %s219_s4  ;;  %vm96_vm1 = vcmask 7168  }
   0xc   :  { %76 = vmatpush.msra.mxu0 %v55_v0  ;;  %v53_v2 = vld [vmem:[#allocation5 + $0x8] sm:$0xff]  ;;  %v52_v3 = vld [vmem:[#allocation5] sm:$0xff]  ;;  %v51_v4 = vld [vmem:[#allocation3] sm:$0xff] }
   0xd   :  { %v109_v5 = vld [vmem:[%s217_s2] ss:$0 sm:$0xff] }
   0xe   :  { %77 = vmatpush.msra.mxu0 %v54_v1  ;;  %v110_v8 = vld [vmem:[%s218_s3] ss:$0 sm:$0xff] }
  0x10   :  { %78 = vmatpush.msra.mxu0 %v53_v2 }
  0x12   :  { %79 = vmatpush.msra.mxu0 %v52_v3 }
  0x13   :  { %104 = vmatmul.msk.f32.vlgmr.msra.gmra.mxu0 %vm60_vm0, %v51_v4 }
  0x90   :  { %v81_v6 = vpop.f32.mrf.mxu0 }
  0x91   :  { %v82_v7 = vadd.f32 %v109_v5, %v81_v6 }
  0x93   :  { %v84_v9 = vmax.f32 %v82_v7, 0.0 }
  0x95   :  { %v89_v10 = vmul.f32 %v110_v8, %v84_v9 }
  0x97   :  { %v90_v11 = vsel %vm60_vm0, %v89_v10, 0.0 }
  0x98   :  { %91 = vadd.xlane.f32.xlu0 %v90_v11 }
 0x10b   :  { %v92_v13 = vpop.xlane.xlu0 %91 }
 0x10c   :  { %v95_v14 = vadd.f32 %v94_v12, %v92_v13 }
 0x10e   :  { %97 = vst.msk [vmem:[%s220_s5] sm:$0xff] %vm96_vm1, %v95_v14 }
 0x10f   :  { %102 = vsyncpa [#allocation4], 1 }
 0x110   :  { %103 = vsyncpa [#allocation6], 1 }

</bundles_post_ra>
